<compile_context>
chip_gen: v7x
topology: tpu7x:2x2x1
jax: 0.10.0
libtpu: 0.0.40
codegen_flags: <defaults>
</compile_context>

<pallas_src>
import functools

import jax
import jax.numpy as jnp
from jax.experimental import pallas as pl
from jax.experimental.pallas import tpu as pltpu


def _round_up(x, m):
    return ((x + m - 1) // m) * m


def _ffn_kernel(x_ref, w1_ref, w3_ref, w2_ref, o_ref, acc_ref):
    """One (token-tile, hidden-tile) step of the SwiGLU FFN.

    x_ref  : (tm, dim)      activation tile (resident across the hidden axis)
    w1_ref : (dim, th)      W1 slab for this hidden tile
    w3_ref : (dim, th)      W3 slab for this hidden tile
    w2_ref : (th, dim)      W2 slab for this hidden tile
    o_ref  : (tm, dim)      output tile (resident across the hidden axis)
    acc_ref: (tm, dim) f32  VMEM accumulator
    """
    h = pl.program_id(1)

    @pl.when(h == 0)
    def _():
        acc_ref[...] = jnp.zeros_like(acc_ref)

    x = x_ref[...]                                                     # (tm, dim)
    # Up-projections on the MXU, f32 accumulation.
    h1 = jnp.dot(x, w1_ref[...], preferred_element_type=jnp.float32)  # (tm, th)
    h3 = jnp.dot(x, w3_ref[...], preferred_element_type=jnp.float32)  # (tm, th)
    # SiLU gate in f32 (sigmoid -> EUP, multiplies -> VPU).
    gated = (h1 * jax.nn.sigmoid(h1)) * h3
    # Partial down-projection for this hidden tile, accumulated in f32.
    acc_ref[...] += jnp.dot(gated.astype(w2_ref.dtype), w2_ref[...],
                            preferred_element_type=jnp.float32)

    @pl.when(h == pl.num_programs(1) - 1)
    def _():
        o_ref[...] = acc_ref[...].astype(o_ref.dtype)


def _llama_hidden_dim(dim, hidden_dim, multiple_of, ffn_dim_multiplier):
    hidden_dim = int(2 * hidden_dim / 3)
    if ffn_dim_multiplier is not None:
        hidden_dim = int(ffn_dim_multiplier * hidden_dim)
    hidden_dim = multiple_of * ((hidden_dim + multiple_of - 1) // multiple_of)
    return hidden_dim


@functools.partial(jax.jit, static_argnames=("tm", "th"))
def feed_forward(x, w1, w3, w2, *, tm=256, th=512):
    """x: (batch, seq, dim); w1, w3: (dim, hidden); w2: (hidden, dim).

    Weights are stored (in_features, out_features), i.e. the transpose of the
    nn.Linear weight, so the kernel does row-major matmuls directly.
    """
    batch, seq, dim = x.shape
    hidden = w1.shape[1]
    tokens = batch * seq
    x2d = x.reshape(tokens, dim)

    # ---- tile sizes: clamp for small problems, keep sublane/lane alignment ----
    tm = min(tm, _round_up(tokens, 16))     # 16 covers the bf16 sublane min tile
    th = min(th, _round_up(hidden, 128))    # lane-aligned hidden tile

    tokens_p = _round_up(tokens, tm)
    hidden_p = _round_up(hidden, th)
    nh = hidden_p // th

    # ---- zero padding (mathematically inert: silu(0) * 0 = 0) ----
    if tokens_p != tokens:
        x2d = jnp.pad(x2d, ((0, tokens_p - tokens), (0, 0)))
    if hidden_p != hidden:
        w1 = jnp.pad(w1, ((0, 0), (0, hidden_p - hidden)))
        w3 = jnp.pad(w3, ((0, 0), (0, hidden_p - hidden)))
        w2 = jnp.pad(w2, ((0, hidden_p - hidden), (0, 0)))

    wbytes = jnp.dtype(w1.dtype).itemsize
    xbytes = jnp.dtype(x.dtype).itemsize
    # Double-buffered tiles + f32 accumulator + f32 intermediates (h1, h3, gated).
    vmem_est = (2 * (tm * dim * xbytes            # x tile
                     + 2 * dim * th * wbytes      # w1 + w3 slabs
                     + th * dim * wbytes          # w2 slab
                     + tm * dim * xbytes)         # out tile
                + tm * dim * 4                    # accumulator
                + 3 * tm * th * 4)                # h1 + h3 + gated
    vmem_limit = max(vmem_est + (4 << 20), 32 << 20)

    cost = pl.CostEstimate(
        flops=6 * tokens * dim * hidden,
        transcendentals=tokens * hidden,
        bytes_accessed=(2 * tokens_p * dim * xbytes
                        + 3 * dim * hidden_p * wbytes),
    )

    out2d = pl.pallas_call(
        _ffn_kernel,
        out_shape=jax.ShapeDtypeStruct((tokens_p, dim), x.dtype),
        grid_spec=pltpu.PrefetchScalarGridSpec(
            num_scalar_prefetch=0,
            grid=(tokens_p // tm, nh),                           # hidden axis last
            in_specs=[
                pl.BlockSpec((tm, dim), lambda i, h: (i, 0)),    # x tile (kept across h)
                pl.BlockSpec((dim, th), lambda i, h: (0, h)),    # W1 slab
                pl.BlockSpec((dim, th), lambda i, h: (0, h)),    # W3 slab
                pl.BlockSpec((th, dim), lambda i, h: (h, 0)),    # W2 slab
            ],
            out_specs=pl.BlockSpec((tm, dim), lambda i, h: (i, 0)),
            scratch_shapes=[pltpu.VMEM((tm, dim), jnp.float32)],
        ),
        compiler_params=pltpu.CompilerParams(
            dimension_semantics=("parallel", "arbitrary"),
            vmem_limit_bytes=int(vmem_limit),
        ),
        cost_estimate=cost,
    )(x2d, w1, w3, w2)

    return out2d[:tokens].reshape(batch, seq, dim)


def _reference(x, w1, w3, w2):
    h1 = x @ w1
    h3 = x @ w3
    return (jax.nn.silu(h1) * h3) @ w2


if __name__ == "__main__":
    # Module hyperparameters (small, consistent with llama FeedForward.__init__).
    dim = 32
    hidden_dim_arg = 4 * dim          # llama passes 4*dim
    multiple_of = 32
    ffn_dim_multiplier = None
    hidden = _llama_hidden_dim(dim, hidden_dim_arg, multiple_of,
                               ffn_dim_multiplier)   # -> 96

    batch, seq = 2, 8

    key = jax.random.PRNGKey(0)
    kx, k1, k2, k3 = jax.random.split(key, 4)
    x = jax.random.normal(kx, (batch, seq, dim), dtype=jnp.float32)
    # Weights stored as (in_features, out_features) — transposed nn.Linear weight.
    w1 = jax.random.normal(k1, (dim, hidden), dtype=jnp.float32) * 0.05
    w3 = jax.random.normal(k3, (dim, hidden), dtype=jnp.float32) * 0.05
    w2 = jax.random.normal(k2, (hidden, dim), dtype=jnp.float32) * 0.05

    # f32 path — tight tolerance.
    out = jax.block_until_ready(feed_forward(x, w1, w3, w2))
    ref = _reference(x.reshape(-1, dim), w1, w3, w2).reshape(batch, seq, dim)
    assert out.shape == (batch, seq, dim)
    assert jnp.allclose(out, ref, atol=1e-4, rtol=1e-4), "f32 mismatch vs reference"

    # bf16 path (production dtype: halves HBM traffic, doubles MXU rate).
    xb, w1b, w3b, w2b = (a.astype(jnp.bfloat16) for a in (x, w1, w3, w2))
    outb = jax.block_until_ready(feed_forward(xb, w1b, w3b, w2b))
    refb = _reference(xb.astype(jnp.float32).reshape(-1, dim),
                      w1b.astype(jnp.float32), w3b.astype(jnp.float32),
                      w2b.astype(jnp.float32)).reshape(batch, seq, dim)
    assert jnp.allclose(outb.astype(jnp.float32), refb, atol=5e-2, rtol=5e-2), \
        "bf16 mismatch vs reference"

    print("KERNEL_OK")
</pallas_src>

<mosaic_0001>
module attributes {stable_mosaic.version = 11 : i64} {
  func.func @_ffn_kernel(%arg0: i32, %arg1: i32, %arg2: memref<16x32xf32, #tpu.memory_space<vmem>>, %arg3: memref<32x128xf32, #tpu.memory_space<vmem>>, %arg4: memref<32x128xf32, #tpu.memory_space<vmem>>, %arg5: memref<128x32xf32, #tpu.memory_space<vmem>>, %arg6: memref<16x32xf32, #tpu.memory_space<vmem>>, %arg7: memref<16x32xf32, #tpu.memory_space<vmem>>) attributes {dimension_semantics = [#tpu.dimension_semantics<parallel>, #tpu.dimension_semantics<arbitrary>], iteration_bounds = array<i64: 1, 1>, scalar_prefetch = 0 : i64, scratch_operands = 1 : i64, tpu.core_type = #tpu.core_type<tc>, window_params = [{transform_indices = @transform_0, window_bounds = array<i64: 16, 32>}, {transform_indices = @transform_1, window_bounds = array<i64: 32, 128>}, {transform_indices = @transform_2, window_bounds = array<i64: 32, 128>}, {transform_indices = @transform_3, window_bounds = array<i64: 128, 32>}, {transform_indices = @transform_4, window_bounds = array<i64: 16, 32>}]} {
    %c0_i32 = arith.constant 0 : i32
    %0 = arith.cmpi eq, %arg1, %c0_i32 : i32
    %1 = arith.extui %0 : i1 to i32
    %c0_i32_0 = arith.constant 0 : i32
    %2 = arith.cmpi ne, %1, %c0_i32_0 : i32
    scf.if %2 {
      %cst_17 = arith.constant 0.000000e+00 : f32
      %23 = vector.broadcast %cst_17 : f32 to vector<16x32xf32>
      %c0_18 = arith.constant 0 : index
      %c0_19 = arith.constant 0 : index
      %24 = vector.load %arg7[%c0_18, %c0_19] : memref<16x32xf32, #tpu.memory_space<vmem>>, vector<16x32xf32>
      tpu.vector_store %arg7[%c0_18, %c0_19], %23 {strides = array<i32>} : memref<16x32xf32, #tpu.memory_space<vmem>>, vector<16x32xf32>,
    } else {
    }
    %c0 = arith.constant 0 : index
    %c0_1 = arith.constant 0 : index
    %3 = vector.load %arg2[%c0, %c0_1] : memref<16x32xf32, #tpu.memory_space<vmem>>, vector<16x32xf32>
    %c0_2 = arith.constant 0 : index
    %c0_3 = arith.constant 0 : index
    %4 = vector.load %arg3[%c0_2, %c0_3] : memref<32x128xf32, #tpu.memory_space<vmem>>, vector<32x128xf32>
    %cst = arith.constant dense<0.000000e+00> : vector<16x128xf32>
    %5 = tpu.matmul %3, %4, %cst {dimension_numbers = #tpu.dot_dimension_numbers<[1], [0], [0], [1], [0, 0, 1, 1], [], []>} : vector<16x32xf32>, vector<32x128xf32>, vector<16x128xf32> -> vector<16x128xf32>
    %c0_4 = arith.constant 0 : index
    %c0_5 = arith.constant 0 : index
    %6 = vector.load %arg4[%c0_4, %c0_5] : memref<32x128xf32, #tpu.memory_space<vmem>>, vector<32x128xf32>
    %cst_6 = arith.constant dense<0.000000e+00> : vector<16x128xf32>
    %7 = tpu.matmul %3, %6, %cst_6 {dimension_numbers = #tpu.dot_dimension_numbers<[1], [0], [0], [1], [0, 0, 1, 1], [], []>} : vector<16x32xf32>, vector<32x128xf32>, vector<16x128xf32> -> vector<16x128xf32>
    %8 = arith.negf %5 : vector<16x128xf32>
    %9 = math.exp %8 : vector<16x128xf32>
    %cst_7 = arith.constant 1.000000e+00 : f32
    %10 = vector.broadcast %cst_7 : f32 to vector<16x128xf32>
    %11 = arith.addf %10, %9 : vector<16x128xf32>
    %12 = arith.divf %10, %11 : vector<16x128xf32>
    %13 = arith.mulf %5, %12 : vector<16x128xf32>
    %14 = arith.mulf %13, %7 : vector<16x128xf32>
    %c0_8 = arith.constant 0 : index
    %c0_9 = arith.constant 0 : index
    %15 = vector.load %arg7[%c0_8, %c0_9] : memref<16x32xf32, #tpu.memory_space<vmem>>, vector<16x32xf32>
    %c0_10 = arith.constant 0 : index
    %c0_11 = arith.constant 0 : index
    %16 = vector.load %arg5[%c0_10, %c0_11] : memref<128x32xf32, #tpu.memory_space<vmem>>, vector<128x32xf32>
    %cst_12 = arith.constant dense<0.000000e+00> : vector<16x32xf32>
    %17 = tpu.matmul %14, %16, %cst_12 {dimension_numbers = #tpu.dot_dimension_numbers<[1], [0], [0], [1], [0, 0, 1, 1], [], []>} : vector<16x128xf32>, vector<128x32xf32>, vector<16x32xf32> -> vector<16x32xf32>
    %18 = arith.addf %15, %17 : vector<16x32xf32>
    %c0_13 = arith.constant 0 : index
    %c0_14 = arith.constant 0 : index
    %19 = vector.load %arg7[%c0_13, %c0_14] : memref<16x32xf32, #tpu.memory_space<vmem>>, vector<16x32xf32>
    tpu.vector_store %arg7[%c0_13, %c0_14], %18 {strides = array<i32>} : memref<16x32xf32, #tpu.memory_space<vmem>>, vector<16x32xf32>,
    %c0_i32_15 = arith.constant 0 : i32
    %20 = arith.cmpi eq, %arg1, %c0_i32_15 : i32
    %21 = arith.extui %20 : i1 to i32
    %c0_i32_16 = arith.constant 0 : i32
    %22 = arith.cmpi ne, %21, %c0_i32_16 : i32
    scf.if %22 {
      %c0_17 = arith.constant 0 : index
      %c0_18 = arith.constant 0 : index
      %23 = vector.load %arg7[%c0_17, %c0_18] : memref<16x32xf32, #tpu.memory_space<vmem>>, vector<16x32xf32>
      %c0_19 = arith.constant 0 : index
      %c0_20 = arith.constant 0 : index
      %24 = vector.load %arg6[%c0_19, %c0_20] : memref<16x32xf32, #tpu.memory_space<vmem>>, vector<16x32xf32>
      tpu.vector_store %arg6[%c0_19, %c0_20], %23 {strides = array<i32>} : memref<16x32xf32, #tpu.memory_space<vmem>>, vector<16x32xf32>,
    } else {
    }
    return
  }
  func.func @transform_0(%arg0: i32, %arg1: i32) -> (i32, i32) {
    %c0_i32 = arith.constant 0 : i32
    %c0_i32_0 = arith.constant 0 : i32
    return %arg0, %c0_i32 : i32, i32
  }
  func.func @transform_1(%arg0: i32, %arg1: i32) -> (i32, i32) {
    %c0_i32 = arith.constant 0 : i32
    %c0_i32_0 = arith.constant 0 : i32
    return %c0_i32, %arg1 : i32, i32
  }
  func.func @transform_2(%arg0: i32, %arg1: i32) -> (i32, i32) {
    %c0_i32 = arith.constant 0 : i32
    %c0_i32_0 = arith.constant 0 : i32
    return %c0_i32, %arg1 : i32, i32
  }
  func.func @transform_3(%arg0: i32, %arg1: i32) -> (i32, i32) {
    %c0_i32 = arith.constant 0 : i32
    %c0_i32_0 = arith.constant 0 : i32
    return %arg1, %c0_i32 : i32, i32
  }
  func.func @transform_4(%arg0: i32, %arg1: i32) -> (i32, i32) {
    %c0_i32 = arith.constant 0 : i32
    %c0_i32_0 = arith.constant 0 : i32
    return %arg0, %c0_i32 : i32, i32
  }
}

</mosaic_0001>

<bundles_post_ra>
// kernel: feed_forward.1
= control target key start
LH: loop header
LB: loop body
LE: loop exit
PB: predicated region body
PF: predicated region fallthrough
CT: control target
= control target key end

     0   :  { %vm22_vm0 = vcmask 261120   ;;  %s634_s0 = inlined_call_operand.vmem [shape: f32[16,32], index: 0, kind: input, shape index: {}]   ;;  %s635_s1 = inlined_call_operand.vmem [shape: f32[32,128], index: 1, kind: input, shape index: {}]   ;;  %s636_s2 = inlined_call_operand.vmem [shape: f32[32,128], index: 2, kind: input, shape index: {}]   ;;  %s637_s3 = inlined_call_operand.vmem [shape: f32[128,32], index: 3, kind: input, shape index: {}]   ;;  %s638_s4 = inlined_call_operand.hbm [shape: f32[16,32], index: 4, kind: output, shape index: {}]  }
   0x1   :  { %v27_v0 = vld [vmem:[%s635_s1] sm:$0xff]  ;;  %v28_v1 = vld [vmem:[%s635_s1 + $0x8] sm:$0xff]  ;;  %v29_v2 = vld [vmem:[%s635_s1 + $0x10] sm:$0xff] }
   0x2   :  { %v421_v3 = vpack.c.bf16 %v28_v1, %v27_v0  ;;  %v30_v4 = vld [vmem:[%s635_s1 + $0x18] sm:$0xff]  ;;  %v25_v5 = vld [vmem:[%s634_s0] sm:$0xff]  ;;  %v114_v8 = vld [vmem:[%s636_s2 + $0x8] sm:$0xff] }
   0x3   :  { %v425_v6 = vpack.c.bf16 %v30_v4, %v29_v2  ;;  %372 = vmatprep.mubr.msk.f32.mxu1 %vm22_vm0, %v25_v5  ;;  %v113_v7 = vld [vmem:[%s636_s2] sm:$0xff] }
   0x4   :  { %422 = vmatprep.subr.bf16.mxu1 %v421_v3 }
   0x5   :  { %9 = vsyncpa [#allocation4], 0  ;;  %424 = vmatpush3.bf16.msra.mxu1 %v421_v3  ;;  %v429_v9 = vpack.c.bf16 %v114_v8, %v113_v7  ;;  %v115_v10 = vld [vmem:[%s636_s2 + $0x10] sm:$0xff]  ;;  %v116_v11 = vld [vmem:[%s636_s2 + $0x18] sm:$0xff]  ;;  %v505_v38 = vmov 0.0  }
   0x6   :  { %426 = vmatprep.subr.bf16.mxu1 %v425_v6  ;;  %v26_v12 = vld [vmem:[%s634_s0 + $0x8] sm:$0xff]  ;;  %v433_v13 = vpack.c.bf16 %v116_v11, %v115_v10  ;;  %v210_v14 = vld [vmem:[%s637_s3] sm:$0xff]  ;;  %v212_v17 = vld [vmem:[%s637_s3 + $0x10] sm:$0xff]  ;;  %24 = vst.msk [vmem:[#allocation2 + $0x8] sm:$0xff] %vm22_vm0, %v505_v38 }
   0x7   :  { %v211_v15 = vld [vmem:[%s637_s3 + $0x8] sm:$0xff]  ;;  %v213_v18 = vld [vmem:[%s637_s3 + $0x18] sm:$0xff]  ;;  %v214_v20 = vld [vmem:[%s637_s3 + $0x20] sm:$0xff]  ;;  %23 = vst.msk [vmem:[#allocation2] sm:$0xff] %vm22_vm0, %v505_v38 }
   0x8   :  { %v437_v16 = vpack.c.bf16 %v211_v15, %v210_v14  ;;  %v441_v19 = vpack.c.bf16 %v213_v18, %v212_v17  ;;  %v215_v21 = vld [vmem:[%s637_s3 + $0x28] sm:$0xff]  ;;  %v216_v23 = vld [vmem:[%s637_s3 + $0x30] sm:$0xff]  ;;  %v217_v24 = vld [vmem:[%s637_s3 + $0x38] sm:$0xff] }
   0x9   :  { %428 = vmatpush3.bf16.msra.mxu1 %v425_v6  ;;  %v445_v22 = vpack.c.bf16 %v215_v21, %v214_v20  ;;  %v449_v25 = vpack.c.bf16 %v217_v24, %v216_v23  ;;  %v218_v26 = vld [vmem:[%s637_s3 + $0x40] sm:$0xff]  ;;  %v219_v27 = vld [vmem:[%s637_s3 + $0x48] sm:$0xff]  ;;  %v220_v29 = vld [vmem:[%s637_s3 + $0x50] sm:$0xff] }
   0xa   :  { %430 = vmatprep.subr.bf16.mxu1 %v429_v9  ;;  %438 = vmatprep.subr.bf16.mxu0 %v437_v16  ;;  %v453_v28 = vpack.c.bf16 %v219_v27, %v218_v26  ;;  %v221_v30 = vld [vmem:[%s637_s3 + $0x58] sm:$0xff]  ;;  %v222_v32 = vld [vmem:[%s637_s3 + $0x60] sm:$0xff]  ;;  %v223_v33 = vld [vmem:[%s637_s3 + $0x68] sm:$0xff] }
   0xb   :  { %440 = vmatpush3.bf16.msra.mxu0 %v437_v16  ;;  %v457_v31 = vpack.c.bf16 %v221_v30, %v220_v29  ;;  %v461_v34 = vpack.c.bf16 %v223_v33, %v222_v32  ;;  %v224_v35 = vld [vmem:[%s637_s3 + $0x70] sm:$0xff]  ;;  %v225_v36 = vld [vmem:[%s637_s3 + $0x78] sm:$0xff]  ;;  %s506_s3 = smov [#allocation3]  }
   0xc   :  { %373 = vmatmul.mubr.msk.f32.vlgmr.msra.gmra.mrb[0].mxu1 %vm22_vm0, %v26_v12  ;;  %442 = vmatprep.subr.bf16.mxu0 %v441_v19  ;;  %v465_v37 = vpack.c.bf16 %v225_v36, %v224_v35  ;;  %s317_s10 = sshll.u32 %s506_s3, 4  ;;  %s318_s10 = int_to_ptr.vmem [resolvable:$true] %s317_s10 }
   0xd   :  { %432 = vmatpush3.bf16.msra.mxu1 %v429_v9  ;;  %383 = vmatprep.mubr.msk.f32.mxu1 %vm22_vm0, %v25_v5  ;;  %v209_v55 = vld [vmem:[#allocation2 + $0x8] sm:$0xff]  ;;  %s481_s0 = scalar_lea.vmem %s318_s10, 256  ;;  %p486_p1 = scmp.lt.s32.totalorder %s318_s10, %s318_s10 }
   0xe   :  { %434 = vmatprep.subr.bf16.mxu1 %v433_v13  ;;  %v208_v56 = vld [vmem:[#allocation2] sm:$0xff]  ;;  %p482_p0 = scmp.ne.s32.totalorder %s318_s10, %s481_s0  ;;  %p487_p2 = scmp.lt.s32.totalorder %s481_s0, %s481_s0 }
   0xf   :  { %444 = vmatpush3.bf16.msra.mxu0 %v441_v19 }
  0x10   :  { %446 = vmatprep.subr.bf16.mxu0 %v445_v22  ;;  %p488_p3 = por %p487_p2, %p486_p1 }
  0x11   :  { %436 = vmatpush3.bf16.msra.mxu1 %v433_v13 }
  0x12   :  { %p489_p4 = pnand %p488_p3, %p482_p0 }
  0x13   :  { %448 = vmatpush3.bf16.msra.mxu0 %v445_v22 }
  0x14   :  { %384 = vmatmul.mubr.msk.f32.vlgmr.msra.gmra.mrb[2].mxu1 %vm22_vm0, %v26_v12  ;;  %450 = vmatprep.subr.bf16.mxu0 %v449_v25 }
  0x17   :  { %452 = vmatpush3.bf16.msra.mxu0 %v449_v25 }
  0x18   :  { %454 = vmatprep.subr.bf16.mxu0 %v453_v28 }
  0x1b   :  { %456 = vmatpush3.bf16.msra.mxu0 %v453_v28 }
  0x1c   :  { %458 = vmatprep.subr.bf16.mxu0 %v457_v31 }
  0x1f   :  { %460 = vmatpush3.bf16.msra.mxu0 %v457_v31 }
  0x20   :  { %462 = vmatprep.subr.bf16.mxu0 %v461_v34 }
  0x23   :  { %464 = vmatpush3.bf16.msra.mxu0 %v461_v34 }
  0x24   :  { %466 = vmatprep.subr.bf16.mxu0 %v465_v37 }
  0x27   :  { %468 = vmatpush3.bf16.msra.mxu0 %v465_v37 }
  0xdf   :  { %v374_v39 = vpop.f32.mrb[0].mxu1 }
  0xe0   :  { %v333_v40 = vmul.f32 -1.442695, %v374_v39  ;;  %v104_v41 = vpop.f32.mrb[1].mxu1 }
  0xe1   :  { %v332_v42 = vmul.f32 -1.442695, %v104_v41 }
  0xe2   :  { %473 = vpow2.f32 %v333_v40 }
  0xe3   :  { %475 = vpow2.f32 %v332_v42 }
  0xe7   :  { %v385_v43 = vpop.f32.mrb[2].mxu1 }
  0xe8   :  { %v183_v44 = vpop.f32.mrb[3].mxu1 }
  0xec   :  { %v474_v45 = vpop.eup %473 }
  0xed   :  { %v476_v46 = vpop.eup %475  ;;  %v199_v47 = vadd.f32 1.0, %v474_v45 }
  0xee   :  { %v198_v48 = vadd.f32 1.0, %v476_v46 }
  0xef   :  { %477 = vrcp.f32 %v199_v47 }
  0xf0   :  { %479 = vrcp.f32 %v198_v48 }
  0xf9   :  { %v478_v49 = vpop.eup %477 }
  0xfa   :  { %v480_v50 = vpop.eup %479  ;;  %v205_v51 = vmul.f32 %v478_v49, %v374_v39 }
  0xfb   :  { %v204_v52 = vmul.f32 %v480_v50, %v104_v41 }
  0xfc   :  { %v207_v53 = vmul.f32 %v385_v43, %v205_v51 }
  0xfd   :  { %v206_v54 = vmul.f32 %v204_v52, %v183_v44 }
  0xff   :  { %418 = vmatprep.mubr.f32.mxu0 %v206_v54 }
 0x100   :  { %419 = vmatmul.mubr.f32.vlgmr.msra.gmra.mrb[0].mxu0 %v207_v53 }
 0x1d3   :  { %v420_v57 = vpop.f32.mrb[0].mxu0 }
 0x1d4   :  { %v302_v58 = vadd.f32 %v420_v57, %v209_v55  ;;  %v292_v59 = vpop.f32.mrb[1].mxu0 }
 0x1d5   :  { %v301_v60 = vadd.f32 %v292_v59, %v208_v56 }
 0x1d6   :  { %304 = vst.msk [vmem:[#allocation2 + $0x8] sm:$0xff] %vm22_vm0, %v302_v58 }
 0x1d7   :  { %303 = vst.msk [vmem:[#allocation2] sm:$0xff] %vm22_vm0, %v301_v60 }
 0x1dd   :  { %v309_v61 = vld [vmem:[#allocation2 + $0x8] sm:$0xff] }
 0x1de   :  { %v308_v62 = vld [vmem:[#allocation2] sm:$0xff]  ;;  %311 = vst.msk [vmem:[#allocation3 + $0x8] sm:$0xff] %vm22_vm0, %v309_v61 }
 0x1df   :  { %310 = vst.msk [vmem:[#allocation3] sm:$0xff] %vm22_vm0, %v308_v62 }
 0x1e0   :  { %492 = shalt.err (!%p489_p4)
}
 0x1e1   :  { %s493_s13 = scalar_lea.hbm %s638_s4, 256 }
 0x1e2   :  { %p494_p5 = scmp.ne.s32.totalorder %s638_s4, %s493_s13  ;;  %p497_p6 = scmp.lt.u32.totalorder %s493_s13, %s638_s4 }
 0x1e4   :  { %p499_p7 = pnand %p497_p6, %p494_p5 }
 0x1e6   :  { %502 = shalt.err (!%p499_p7)
}
 0x1e7   :  { %s507_s18 = smov 128   ;;  %s508_s19 = smov 8  }
 0x1e8   :  { %323 = dma.vmem_to_hbm [thread:$0]  %s318_s10, 256, %s638_s4, [#allocation4], %s507_s18, %s507_s18, %s508_s19  }
 0x1e9   :  { %503 = dma.done.wait [#allocation4], 256  }
 0x1ea   :  { %504 = vsyncadd [#allocation4], 4294967040 }
 0x1eb   :  { %327 = vsyncpa [#allocation4], 1 }

</bundles_post_ra>
